<compile_context>
chip_gen: v5e
topology: v5e:2x2
jax: 0.10.0
libtpu: 0.0.40
codegen_flags: <defaults>
</compile_context>

<pallas_src>
import jax
import jax.numpy as jnp
import numpy as np
from jax.experimental import pallas as pl
from jax.experimental.pallas import tpu as pltpu

LANE = 128
SUBLANE = 8


def _round_up(x, m):
    return (x + m - 1) // m * m


# ------------------------------ Pallas kernel -------------------------------

def _critic_mlp_kernel(x_ref,
                       w1_ref, b1_ref,
                       w2_ref, b2_ref,
                       w3_ref, b3_ref,
                       w4_ref, b4_ref,
                       w5_ref, b5_ref,
                       o_ref):
    """Fused 5-layer MLP on one row tile. Weights are pre-padded lane-dense."""

    def mm(a, b):
        return jnp.dot(a, b, preferred_element_type=jnp.float32)

    h = jnp.maximum(mm(x_ref[...], w1_ref[...]) + b1_ref[...], 0.0)
    h = jnp.maximum(mm(h, w2_ref[...]) + b2_ref[...], 0.0)
    h = jnp.maximum(mm(h, w3_ref[...]) + b3_ref[...], 0.0)
    h = jnp.maximum(mm(h, w4_ref[...]) + b4_ref[...], 0.0)
    # Lane-dense (tm, 128) store; padded columns are exact zeros.
    o_ref[...] = (mm(h, w5_ref[...]) + b5_ref[...]).astype(o_ref.dtype)


# --------------------------- One-time parameter prep -------------------------

def prepare_params(params, dtype=jnp.float32):
    """One-time padding of the raw DiscreteCritic params (NOT per-forward):
    hidden dim -> 128 lanes, action dim -> 128 lanes, biases -> (1, N)."""
    S0, H = params["w1"].shape
    A = params["w5"].shape[1]
    Hp = _round_up(H, LANE)
    Ap = _round_up(max(A, 1), LANE)

    def pad_w(w, rows, cols):
        out = jnp.zeros((rows, cols), dtype)
        return out.at[: w.shape[0], : w.shape[1]].set(w.astype(dtype))

    def pad_b(b, cols):
        out = jnp.zeros((1, cols), dtype)
        return out.at[0, : b.shape[0]].set(b.astype(dtype))

    return {
        "w1": pad_w(params["w1"], S0, Hp), "b1": pad_b(params["b1"], Hp),
        "w2": pad_w(params["w2"], Hp, Hp), "b2": pad_b(params["b2"], Hp),
        "w3": pad_w(params["w3"], Hp, Hp), "b3": pad_b(params["b3"], Hp),
        "w4": pad_w(params["w4"], Hp, Hp), "b4": pad_b(params["b4"], Hp),
        "w5": pad_w(params["w5"], Hp, Ap), "b5": pad_b(params["b5"], Ap),
    }


# ------------------------------- Row tiling ----------------------------------

def _row_tiling(B, block_m):
    # Clamp to a multiple of 8 sublanes so the (tm, S0) block never violates
    # the (8,128) rule regardless of the caller's block_m.
    block_m = max(SUBLANE, (block_m // SUBLANE) * SUBLANE)
    Bp8 = _round_up(B, SUBLANE)
    # >= 2 balanced steps when there are enough rows, so ("parallel",) can
    # shard across v7x's two TensorCores; keep tiles <= block_m otherwise.
    n_tiles = max(pl.cdiv(Bp8, block_m), 2 if Bp8 >= 2 * SUBLANE else 1)
    tm = _round_up(pl.cdiv(Bp8, n_tiles), SUBLANE)
    grid = pl.cdiv(Bp8, tm)
    return tm, grid, tm * grid


# --------------------------------- Wrapper ------------------------------------

def discrete_critic_forward(prepped, x, num_actions, *, block_m=1024):
    """Q-values: (B, S0) -> (B, num_actions). `prepped` from prepare_params."""
    B, S0 = x.shape
    Hp = prepped["w1"].shape[1]
    Ap = prepped["w5"].shape[1]

    tm, grid, Bp = _row_tiling(B, block_m)

    x = x.astype(prepped["w1"].dtype)
    # Pad only the small tail (no full zero-array pass); skip when aligned.
    x_in = x if Bp == B else jnp.pad(x, ((0, Bp - B), (0, 0)))

    rep = lambda i: (0, 0)  # weights/biases: same VMEM-resident block each step

    out = pl.pallas_call(
        _critic_mlp_kernel,
        out_shape=jax.ShapeDtypeStruct((Bp, Ap), jnp.float32),
        grid=(grid,),
        in_specs=[
            pl.BlockSpec((tm, S0), lambda i: (i, 0)),      # batch-row tile
            pl.BlockSpec((S0, Hp), rep), pl.BlockSpec((1, Hp), rep),
            pl.BlockSpec((Hp, Hp), rep), pl.BlockSpec((1, Hp), rep),
            pl.BlockSpec((Hp, Hp), rep), pl.BlockSpec((1, Hp), rep),
            pl.BlockSpec((Hp, Hp), rep), pl.BlockSpec((1, Hp), rep),
            pl.BlockSpec((Hp, Ap), rep), pl.BlockSpec((1, Ap), rep),
        ],
        out_specs=pl.BlockSpec((tm, Ap), lambda i: (i, 0)),
        compiler_params=pltpu.CompilerParams(
            dimension_semantics=("parallel",)),            # v7x: rows across 2 TCs
    )(x_in,
      prepped["w1"], prepped["b1"],
      prepped["w2"], prepped["b2"],
      prepped["w3"], prepped["b3"],
      prepped["w4"], prepped["b4"],
      prepped["w5"], prepped["b5"])

    # Callers that can consume the padded (Bp, 128) block directly should do
    # so and skip this extra slice pass over the output.
    return out[:B, :num_actions]


# --------------------------- Parameter construction --------------------------

def init_params(key, S0, A, hidden_size=64):
    ks = jax.random.split(key, 10)

    def rnd(k, shape, scale=0.05):
        return (scale * jax.random.normal(k, shape)).astype(jnp.float32)

    return {
        "w1": rnd(ks[0], (S0, hidden_size)), "b1": rnd(ks[1], (hidden_size,)),
        "w2": rnd(ks[2], (hidden_size, hidden_size)), "b2": rnd(ks[3], (hidden_size,)),
        "w3": rnd(ks[4], (hidden_size, hidden_size)), "b3": rnd(ks[5], (hidden_size,)),
        "w4": rnd(ks[6], (hidden_size, hidden_size)), "b4": rnd(ks[7], (hidden_size,)),
        "w5": rnd(ks[8], (hidden_size, A)), "b5": rnd(ks[9], (A,)),
    }


# ------------------------------ Pure-JAX reference ---------------------------

def reference_forward(params, x):
    h = jnp.maximum(x @ params["w1"] + params["b1"], 0.0)
    h = jnp.maximum(h @ params["w2"] + params["b2"], 0.0)
    h = jnp.maximum(h @ params["w3"] + params["b3"], 0.0)
    h = jnp.maximum(h @ params["w4"] + params["b4"], 0.0)
    return h @ params["w5"] + params["b5"]


if __name__ == "__main__":
    # Small deterministic shapes: state dim 16, 6 actions, hidden 64, batch 2.
    B, S0, A, H = 2, 16, 6, 64

    key = jax.random.PRNGKey(0)
    pkey, xkey = jax.random.split(key)
    params = init_params(pkey, S0, A, hidden_size=H)
    prepped = prepare_params(params)          # one-time prep, out of hot path
    x = jax.random.normal(xkey, (B, S0), dtype=jnp.float32)

    q = jax.block_until_ready(discrete_critic_forward(prepped, x, A))
    ref = jax.block_until_ready(reference_forward(params, x))

    assert q.shape == (B, A)
    np.testing.assert_allclose(np.asarray(q), np.asarray(ref), rtol=1e-3, atol=1e-4)

    print("KERNEL_OK")
</pallas_src>

<mosaic_0001>
module attributes {stable_mosaic.version = 11 : i64} {
  func.func @_critic_mlp_kernel(%arg0: i32, %arg1: memref<8x16xf32, #tpu.memory_space<vmem>>, %arg2: memref<16x128xf32, #tpu.memory_space<vmem>>, %arg3: memref<1x128xf32, #tpu.memory_space<vmem>>, %arg4: memref<128x128xf32, #tpu.memory_space<vmem>>, %arg5: memref<1x128xf32, #tpu.memory_space<vmem>>, %arg6: memref<128x128xf32, #tpu.memory_space<vmem>>, %arg7: memref<1x128xf32, #tpu.memory_space<vmem>>, %arg8: memref<128x128xf32, #tpu.memory_space<vmem>>, %arg9: memref<1x128xf32, #tpu.memory_space<vmem>>, %arg10: memref<128x128xf32, #tpu.memory_space<vmem>>, %arg11: memref<1x128xf32, #tpu.memory_space<vmem>>, %arg12: memref<8x128xf32, #tpu.memory_space<vmem>>) attributes {dimension_semantics = [#tpu.dimension_semantics<parallel>], iteration_bounds = array<i64: 1>, scalar_prefetch = 0 : i64, scratch_operands = 0 : i64, tpu.core_type = #tpu.core_type<tc>, window_params = [{transform_indices = @transform_0, window_bounds = array<i64: 8, 16>}, {pipeline_mode = #tpu.pipeline_mode<synchronous>, transform_indices = @transform_1, window_bounds = array<i64: 16, 128>}, {pipeline_mode = #tpu.pipeline_mode<synchronous>, transform_indices = @transform_2, window_bounds = array<i64: 1, 128>}, {pipeline_mode = #tpu.pipeline_mode<synchronous>, transform_indices = @transform_3, window_bounds = array<i64: 128, 128>}, {pipeline_mode = #tpu.pipeline_mode<synchronous>, transform_indices = @transform_4, window_bounds = array<i64: 1, 128>}, {pipeline_mode = #tpu.pipeline_mode<synchronous>, transform_indices = @transform_5, window_bounds = array<i64: 128, 128>}, {pipeline_mode = #tpu.pipeline_mode<synchronous>, transform_indices = @transform_6, window_bounds = array<i64: 1, 128>}, {pipeline_mode = #tpu.pipeline_mode<synchronous>, transform_indices = @transform_7, window_bounds = array<i64: 128, 128>}, {pipeline_mode = #tpu.pipeline_mode<synchronous>, transform_indices = @transform_8, window_bounds = array<i64: 1, 128>}, {pipeline_mode = #tpu.pipeline_mode<synchronous>, transform_indices = @transform_9, window_bounds = array<i64: 128, 128>}, {pipeline_mode = #tpu.pipeline_mode<synchronous>, transform_indices = @transform_10, window_bounds = array<i64: 1, 128>}, {transform_indices = @transform_11, window_bounds = array<i64: 8, 128>}]} {
    %c0 = arith.constant 0 : index
    %c0_0 = arith.constant 0 : index
    %0 = vector.load %arg1[%c0, %c0_0] : memref<8x16xf32, #tpu.memory_space<vmem>>, vector<8x16xf32>
    %c0_1 = arith.constant 0 : index
    %c0_2 = arith.constant 0 : index
    %1 = vector.load %arg2[%c0_1, %c0_2] : memref<16x128xf32, #tpu.memory_space<vmem>>, vector<16x128xf32>
    %cst = arith.constant dense<0.000000e+00> : vector<8x128xf32>
    %2 = tpu.matmul %0, %1, %cst {dimension_numbers = #tpu.dot_dimension_numbers<[1], [0], [0], [1], [0, 0, 1, 1], [], []>} : vector<8x16xf32>, vector<16x128xf32>, vector<8x128xf32> -> vector<8x128xf32>
    %c0_3 = arith.constant 0 : index
    %c0_4 = arith.constant 0 : index
    %3 = vector.load %arg3[%c0_3, %c0_4] : memref<1x128xf32, #tpu.memory_space<vmem>>, vector<1x128xf32>
    %4 = vector.broadcast %3 : vector<1x128xf32> to vector<8x128xf32>
    %5 = arith.addf %2, %4 : vector<8x128xf32>
    %cst_5 = arith.constant 0.000000e+00 : f32
    %6 = vector.broadcast %cst_5 : f32 to vector<8x128xf32>
    %7 = arith.maximumf %5, %6 : vector<8x128xf32>
    %c0_6 = arith.constant 0 : index
    %c0_7 = arith.constant 0 : index
    %8 = vector.load %arg4[%c0_6, %c0_7] : memref<128x128xf32, #tpu.memory_space<vmem>>, vector<128x128xf32>
    %cst_8 = arith.constant dense<0.000000e+00> : vector<8x128xf32>
    %9 = tpu.matmul %7, %8, %cst_8 {dimension_numbers = #tpu.dot_dimension_numbers<[1], [0], [0], [1], [0, 0, 1, 1], [], []>} : vector<8x128xf32>, vector<128x128xf32>, vector<8x128xf32> -> vector<8x128xf32>
    %c0_9 = arith.constant 0 : index
    %c0_10 = arith.constant 0 : index
    %10 = vector.load %arg5[%c0_9, %c0_10] : memref<1x128xf32, #tpu.memory_space<vmem>>, vector<1x128xf32>
    %11 = vector.broadcast %10 : vector<1x128xf32> to vector<8x128xf32>
    %12 = arith.addf %9, %11 : vector<8x128xf32>
    %cst_11 = arith.constant 0.000000e+00 : f32
    %13 = vector.broadcast %cst_11 : f32 to vector<8x128xf32>
    %14 = arith.maximumf %12, %13 : vector<8x128xf32>
    %c0_12 = arith.constant 0 : index
    %c0_13 = arith.constant 0 : index
    %15 = vector.load %arg6[%c0_12, %c0_13] : memref<128x128xf32, #tpu.memory_space<vmem>>, vector<128x128xf32>
    %cst_14 = arith.constant dense<0.000000e+00> : vector<8x128xf32>
    %16 = tpu.matmul %14, %15, %cst_14 {dimension_numbers = #tpu.dot_dimension_numbers<[1], [0], [0], [1], [0, 0, 1, 1], [], []>} : vector<8x128xf32>, vector<128x128xf32>, vector<8x128xf32> -> vector<8x128xf32>
    %c0_15 = arith.constant 0 : index
    %c0_16 = arith.constant 0 : index
    %17 = vector.load %arg7[%c0_15, %c0_16] : memref<1x128xf32, #tpu.memory_space<vmem>>, vector<1x128xf32>
    %18 = vector.broadcast %17 : vector<1x128xf32> to vector<8x128xf32>
    %19 = arith.addf %16, %18 : vector<8x128xf32>
    %cst_17 = arith.constant 0.000000e+00 : f32
    %20 = vector.broadcast %cst_17 : f32 to vector<8x128xf32>
    %21 = arith.maximumf %19, %20 : vector<8x128xf32>
    %c0_18 = arith.constant 0 : index
    %c0_19 = arith.constant 0 : index
    %22 = vector.load %arg8[%c0_18, %c0_19] : memref<128x128xf32, #tpu.memory_space<vmem>>, vector<128x128xf32>
    %cst_20 = arith.constant dense<0.000000e+00> : vector<8x128xf32>
    %23 = tpu.matmul %21, %22, %cst_20 {dimension_numbers = #tpu.dot_dimension_numbers<[1], [0], [0], [1], [0, 0, 1, 1], [], []>} : vector<8x128xf32>, vector<128x128xf32>, vector<8x128xf32> -> vector<8x128xf32>
    %c0_21 = arith.constant 0 : index
    %c0_22 = arith.constant 0 : index
    %24 = vector.load %arg9[%c0_21, %c0_22] : memref<1x128xf32, #tpu.memory_space<vmem>>, vector<1x128xf32>
    %25 = vector.broadcast %24 : vector<1x128xf32> to vector<8x128xf32>
    %26 = arith.addf %23, %25 : vector<8x128xf32>
    %cst_23 = arith.constant 0.000000e+00 : f32
    %27 = vector.broadcast %cst_23 : f32 to vector<8x128xf32>
    %28 = arith.maximumf %26, %27 : vector<8x128xf32>
    %c0_24 = arith.constant 0 : index
    %c0_25 = arith.constant 0 : index
    %29 = vector.load %arg10[%c0_24, %c0_25] : memref<128x128xf32, #tpu.memory_space<vmem>>, vector<128x128xf32>
    %cst_26 = arith.constant dense<0.000000e+00> : vector<8x128xf32>
    %30 = tpu.matmul %28, %29, %cst_26 {dimension_numbers = #tpu.dot_dimension_numbers<[1], [0], [0], [1], [0, 0, 1, 1], [], []>} : vector<8x128xf32>, vector<128x128xf32>, vector<8x128xf32> -> vector<8x128xf32>
    %c0_27 = arith.constant 0 : index
    %c0_28 = arith.constant 0 : index
    %31 = vector.load %arg11[%c0_27, %c0_28] : memref<1x128xf32, #tpu.memory_space<vmem>>, vector<1x128xf32>
    %32 = vector.broadcast %31 : vector<1x128xf32> to vector<8x128xf32>
    %33 = arith.addf %30, %32 : vector<8x128xf32>
    %c0_29 = arith.constant 0 : index
    %c0_30 = arith.constant 0 : index
    %34 = vector.load %arg12[%c0_29, %c0_30] : memref<8x128xf32, #tpu.memory_space<vmem>>, vector<8x128xf32>
    tpu.vector_store %arg12[%c0_29, %c0_30], %33 {strides = array<i32>} : memref<8x128xf32, #tpu.memory_space<vmem>>, vector<8x128xf32>,
    return
  }
  func.func @transform_0(%arg0: i32) -> (i32, i32) {
    %c0_i32 = arith.constant 0 : i32
    %c0_i32_0 = arith.constant 0 : i32
    return %arg0, %c0_i32 : i32, i32
  }
  func.func @transform_1(%arg0: i32) -> (i32, i32) {
    %c0_i32 = arith.constant 0 : i32
    %c0_i32_0 = arith.constant 0 : i32
    %c0_i32_1 = arith.constant 0 : i32
    return %c0_i32, %c0_i32_0 : i32, i32
  }
  func.func @transform_2(%arg0: i32) -> (i32, i32) {
    %c0_i32 = arith.constant 0 : i32
    %c0_i32_0 = arith.constant 0 : i32
    %c0_i32_1 = arith.constant 0 : i32
    return %c0_i32, %c0_i32_0 : i32, i32
  }
  func.func @transform_3(%arg0: i32) -> (i32, i32) {
    %c0_i32 = arith.constant 0 : i32
    %c0_i32_0 = arith.constant 0 : i32
    %c0_i32_1 = arith.constant 0 : i32
    return %c0_i32, %c0_i32_0 : i32, i32
  }
  func.func @transform_4(%arg0: i32) -> (i32, i32) {
    %c0_i32 = arith.constant 0 : i32
    %c0_i32_0 = arith.constant 0 : i32
    %c0_i32_1 = arith.constant 0 : i32
    return %c0_i32, %c0_i32_0 : i32, i32
  }
  func.func @transform_5(%arg0: i32) -> (i32, i32) {
    %c0_i32 = arith.constant 0 : i32
    %c0_i32_0 = arith.constant 0 : i32
    %c0_i32_1 = arith.constant 0 : i32
    return %c0_i32, %c0_i32_0 : i32, i32
  }
  func.func @transform_6(%arg0: i32) -> (i32, i32) {
    %c0_i32 = arith.constant 0 : i32
    %c0_i32_0 = arith.constant 0 : i32
    %c0_i32_1 = arith.constant 0 : i32
    return %c0_i32, %c0_i32_0 : i32, i32
  }
  func.func @transform_7(%arg0: i32) -> (i32, i32) {
    %c0_i32 = arith.constant 0 : i32
    %c0_i32_0 = arith.constant 0 : i32
    %c0_i32_1 = arith.constant 0 : i32
    return %c0_i32, %c0_i32_0 : i32, i32
  }
  func.func @transform_8(%arg0: i32) -> (i32, i32) {
    %c0_i32 = arith.constant 0 : i32
    %c0_i32_0 = arith.constant 0 : i32
    %c0_i32_1 = arith.constant 0 : i32
    return %c0_i32, %c0_i32_0 : i32, i32
  }
  func.func @transform_9(%arg0: i32) -> (i32, i32) {
    %c0_i32 = arith.constant 0 : i32
    %c0_i32_0 = arith.constant 0 : i32
    %c0_i32_1 = arith.constant 0 : i32
    return %c0_i32, %c0_i32_0 : i32, i32
  }
  func.func @transform_10(%arg0: i32) -> (i32, i32) {
    %c0_i32 = arith.constant 0 : i32
    %c0_i32_0 = arith.constant 0 : i32
    %c0_i32_1 = arith.constant 0 : i32
    return %c0_i32, %c0_i32_0 : i32, i32
  }
  func.func @transform_11(%arg0: i32) -> (i32, i32) {
    %c0_i32 = arith.constant 0 : i32
    %c0_i32_0 = arith.constant 0 : i32
    return %arg0, %c0_i32 : i32, i32
  }
}

</mosaic_0001>

<bundles_post_ra>
// kernel: tpu_custom_call.1
= control target key start
LH: loop header
LB: loop body
LE: loop exit
PB: predicated region body
PF: predicated region fallthrough
CT: control target
= control target key end

     0   :  { %16 = vsyncpa [#allocation3], 0  ;;  %s660_s0 = inlined_call_operand.hbm [shape: f32[8,16], index: 0, kind: input, shape index: {}]   ;;  %s661_s1 = inlined_call_operand.hbm [shape: f32[16,128], index: 1, kind: input, shape index: {}]   ;;  %s662_s2 = inlined_call_operand.vmem [shape: f32[1,128], index: 2, kind: input, shape index: {}]   ;;  %s663_s3 = inlined_call_operand.hbm [shape: f32[128,128], index: 3, kind: input, shape index: {}]   ;;  %s664_s4 = inlined_call_operand.vmem [shape: f32[1,128], index: 4, kind: input, shape index: {}]   ;;  %s665_s5 = inlined_call_operand.hbm [shape: f32[128,128], index: 5, kind: input, shape index: {}]   ;;  %s666_s6 = inlined_call_operand.vmem [shape: f32[1,128], index: 6, kind: input, shape index: {}]   ;;  %s667_s7 = inlined_call_operand.hbm [shape: f32[128,128], index: 7, kind: input, shape index: {}]   ;;  %s668_s8 = inlined_call_operand.vmem [shape: f32[1,128], index: 8, kind: input, shape index: {}]   ;;  %s669_s9 = inlined_call_operand.hbm [shape: f32[128,128], index: 9, kind: input, shape index: {}]   ;;  %s670_s10 = inlined_call_operand.vmem [shape: f32[1,128], index: 10, kind: input, shape index: {}]   ;;  %s671_s11 = inlined_call_operand.hbm [shape: f32[8,128], index: 11, kind: output, shape index: {}]  }
   0x1   :  { %17 = vsyncpa [#allocation6], 0 }
   0x2   :  { %18 = vsyncpa [#allocation9], 0 }
   0x3   :  { %19 = vsyncpa [#allocation12], 0  ;;  %s36_s19 = sshll.u32 %s661_s1, 4  ;;  %s37_s19 = int_to_ptr.hbm [resolvable:$true] %s36_s19 }
   0x4   :  { %20 = vsyncpa [#allocation4], 0  ;;  %s540_s20 = smov [#allocation5]   ;;  %s66_s24 = sshll.u32 %s665_s5, 4  ;;  %s67_s24 = int_to_ptr.hbm [resolvable:$true] %s66_s24 }
   0x5   :  { %s38_s21 = sshll.u32 %s540_s20, 4  ;;  %s541_s25 = smov 128   ;;  %s39_s21 = int_to_ptr.vmem [resolvable:$true] %s38_s21 }
   0x6   :  { %s542_s26 = smov 8   ;;  %s543_s27 = smov [#allocation8]  }
   0x7   :  { %44 = dma.hbm_to_vmem [thread:$0]  %s37_s19, 256, %s39_s21, [#allocation6], %s541_s25, %s541_s25, %s542_s26  }
   0x8   :  { %s68_s28 = sshll.u32 %s543_s27, 4  ;;  %s26_s30 = sshll.u32 %s660_s0, 4  ;;  %s69_s28 = int_to_ptr.vmem [resolvable:$true] %s68_s28  ;;  %s27_s30 = int_to_ptr.hbm [resolvable:$true] %s26_s30 }
   0x9   :  { %74 = dma.hbm_to_vmem [thread:$0]  %s67_s24, 2048, %s69_s28, [#allocation9], %s541_s25, %s541_s25, %s542_s26  }
   0xa   :  { %s51_s13 = sshll.u32 %s663_s3, 4  ;;  %s544_s14 = smov [#allocation2]   ;;  %s52_s13 = int_to_ptr.hbm [resolvable:$true] %s51_s13 }
   0xb   :  { %s28_s15 = sshll.u32 %s544_s14, 4  ;;  %s545_s16 = smov [#allocation7]   ;;  %s29_s15 = int_to_ptr.vmem [resolvable:$true] %s28_s15 }
   0xc   :  { %31 = dma.hbm_to_vmem [thread:$0]  %s27_s30, 128, %s29_s15, [#allocation3]  }
   0xd   :  { %s53_s17 = sshll.u32 %s545_s16, 4  ;;  %s81_s0 = sshll.u32 %s667_s7, 4  ;;  %s54_s17 = int_to_ptr.vmem [resolvable:$true] %s53_s17  ;;  %s82_s0 = int_to_ptr.hbm [resolvable:$true] %s81_s0 }
   0xe   :  { %59 = dma.hbm_to_vmem [thread:$0]  %s52_s13, 2048, %s54_s17, [#allocation6], %s541_s25, %s541_s25, %s542_s26  }
   0xf   :  { %s96_s3 = sshll.u32 %s669_s9, 4  ;;  %s546_s22 = smov [#allocation10]   ;;  %s97_s3 = int_to_ptr.hbm [resolvable:$true] %s96_s3 }
  0x10   :  { %s83_s23 = sshll.u32 %s546_s22, 4  ;;  %s547_s24 = smov [#allocation11]   ;;  %s84_s23 = int_to_ptr.vmem [resolvable:$true] %s83_s23 }
  0x11   :  { %89 = dma.hbm_to_vmem [thread:$0]  %s82_s0, 2048, %s84_s23, [#allocation9], %s541_s25, %s541_s25, %s542_s26  }
  0x12   :  { %s98_s7 = sshll.u32 %s547_s24, 4  ;;  %s99_s7 = int_to_ptr.vmem [resolvable:$true] %s98_s7 }
  0x13   :  { %104 = dma.hbm_to_vmem [thread:$0]  %s97_s3, 2048, %s99_s7, [#allocation12], %s541_s25, %s541_s25, %s542_s26  }
  0x14   :  { %530 = dma.done.wait [#allocation3], 128  }
  0x15   :  { %531 = vsyncadd [#allocation3], 4294967168 }
  0x16   :  { %532 = dma.done.wait [#allocation6], 2304  }
  0x17   :  { %533 = vsyncadd [#allocation6], 4294964992 }
  0x18   :  { %534 = dma.done.wait [#allocation9], 4096  }
  0x19   :  { %535 = vsyncadd [#allocation9], 4294963200 }
  0x1a   :  { %536 = dma.done.wait [#allocation12], 2048  }
  0x1b   :  { %537 = vsyncadd [#allocation12], 4294965248  ;;  %v133_v0 = vld [vmem:[#allocation5 + $0x8] sm:$0xff]  ;;  %v132_v1 = vld [vmem:[#allocation5] sm:$0xff]  ;;  %vm138_vm0 = vcmask 130048   ;;  %s548_s30 = smov [#allocation13]  }
  0x1c   :  { %156 = vmatpush.msra.mxu0 %v133_v0  ;;  %v131_v2 = vld [vmem:[#allocation2] sm:$0xff]  ;;  %v178_v3 = vld [vmem:[#allocation7 + $0x78] sm:$0xff]  ;;  %v177_v4 = vld [vmem:[#allocation7 + $0x70] sm:$0xff]  ;;  %s332_s5 = sshll.u32 %s548_s30, 4  ;;  %s334_s14 = sshll.u32 %s671_s11, 4  ;;  %s333_s5 = int_to_ptr.vmem [resolvable:$true] %s332_s5  ;;  %s335_s14 = int_to_ptr.hbm [resolvable:$true] %s334_s14 }
  0x1d   :  { %183 = vmatpush.msra.mxu1 %v178_v3  ;;  %v176_v5 = vld [vmem:[#allocation7 + $0x68] sm:$0xff]  ;;  %v175_v6 = vld [vmem:[#allocation7 + $0x60] sm:$0xff]  ;;  %v174_v7 = vld [vmem:[#allocation7 + $0x58] sm:$0xff] }
  0x1e   :  { %157 = vmatpush.msra.mxu0 %v132_v1  ;;  %v173_v8 = vld [vmem:[#allocation7 + $0x50] sm:$0xff]  ;;  %v172_v9 = vld [vmem:[#allocation7 + $0x48] sm:$0xff]  ;;  %v171_v10 = vld [vmem:[#allocation7 + $0x40] sm:$0xff] }
  0x1f   :  { %347 = vmatmul.msk.f32.vlgmr.msra.gmra.mxu0 %vm138_vm0, %v131_v2  ;;  %184 = vmatpush.msra.mxu1 %v177_v4  ;;  %v170_v11 = vld [vmem:[#allocation7 + $0x38] sm:$0xff]  ;;  %v169_v12 = vld [vmem:[#allocation7 + $0x30] sm:$0xff]  ;;  %v168_v13 = vld [vmem:[#allocation7 + $0x28] sm:$0xff] }
  0x20   :  { %v167_v14 = vld [vmem:[#allocation7 + $0x20] sm:$0xff]  ;;  %v166_v15 = vld [vmem:[#allocation7 + $0x18] sm:$0xff]  ;;  %v165_v16 = vld [vmem:[#allocation7 + $0x10] sm:$0xff] }
  0x21   :  { %185 = vmatpush.msra.mxu1 %v176_v5  ;;  %v164_v17 = vld [vmem:[#allocation7 + $0x8] sm:$0xff]  ;;  %v163_v18 = vld [vmem:[#allocation7] sm:$0xff]  ;;  %v219_v19 = vld [vmem:[#allocation8 + $0x78] sm:$0xff] }
  0x22   :  { %v218_v20 = vld [vmem:[#allocation8 + $0x70] sm:$0xff]  ;;  %224 = vmatpush.msra.mxu2 %v219_v19  ;;  %v217_v21 = vld [vmem:[#allocation8 + $0x68] sm:$0xff]  ;;  %v216_v22 = vld [vmem:[#allocation8 + $0x60] sm:$0xff] }
  0x23   :  { %186 = vmatpush.msra.mxu1 %v175_v6  ;;  %v215_v23 = vld [vmem:[#allocation8 + $0x58] sm:$0xff]  ;;  %v214_v24 = vld [vmem:[#allocation8 + $0x50] sm:$0xff]  ;;  %v213_v25 = vld [vmem:[#allocation8 + $0x48] sm:$0xff] }
  0x24   :  { %225 = vmatpush.msra.mxu2 %v218_v20  ;;  %v212_v26 = vld [vmem:[#allocation8 + $0x40] sm:$0xff]  ;;  %v211_v27 = vld [vmem:[#allocation8 + $0x38] sm:$0xff]  ;;  %v210_v28 = vld [vmem:[#allocation8 + $0x30] sm:$0xff] }
  0x25   :  { %187 = vmatpush.msra.mxu1 %v174_v7  ;;  %v209_v29 = vld [vmem:[#allocation8 + $0x28] sm:$0xff]  ;;  %v208_v30 = vld [vmem:[#allocation8 + $0x20] sm:$0xff]  ;;  %v207_v31 = vld [vmem:[#allocation8 + $0x18] sm:$0xff] }
  0x26   :  { %226 = vmatpush.msra.mxu2 %v217_v21  ;;  %v357_v32 = vld [vmem:[%s662_s2] ss:$0 sm:$0xff]  ;;  %v206_v36 = vld [vmem:[#allocation8 + $0x10] sm:$0xff]  ;;  %v204_v38 = vld [vmem:[#allocation8] sm:$0xff] }
  0x27   :  { %188 = vmatpush.msra.mxu1 %v173_v8  ;;  %v205_v37 = vld [vmem:[#allocation8 + $0x8] sm:$0xff]  ;;  %v260_v39 = vld [vmem:[#allocation10 + $0x78] sm:$0xff]  ;;  %v259_v40 = vld [vmem:[#allocation10 + $0x70] sm:$0xff] }
  0x28   :  { %227 = vmatpush.msra.mxu2 %v216_v22  ;;  %265 = vmatpush.msra.mxu3 %v260_v39  ;;  %v258_v41 = vld [vmem:[#allocation10 + $0x68] sm:$0xff]  ;;  %v257_v42 = vld [vmem:[#allocation10 + $0x60] sm:$0xff]  ;;  %v256_v43 = vld [vmem:[#allocation10 + $0x58] sm:$0xff] }
  0x29   :  { %189 = vmatpush.msra.mxu1 %v172_v9  ;;  %v255_v44 = vld [vmem:[#allocation10 + $0x50] sm:$0xff]  ;;  %v254_v45 = vld [vmem:[#allocation10 + $0x48] sm:$0xff]  ;;  %v253_v46 = vld [vmem:[#allocation10 + $0x40] sm:$0xff] }
  0x2a   :  { %228 = vmatpush.msra.mxu2 %v215_v23  ;;  %266 = vmatpush.msra.mxu3 %v259_v40  ;;  %v252_v47 = vld [vmem:[#allocation10 + $0x38] sm:$0xff]  ;;  %v251_v48 = vld [vmem:[#allocation10 + $0x30] sm:$0xff]  ;;  %v250_v49 = vld [vmem:[#allocation10 + $0x28] sm:$0xff] }
  0x2b   :  { %190 = vmatpush.msra.mxu1 %v171_v10  ;;  %v249_v50 = vld [vmem:[#allocation10 + $0x20] sm:$0xff]  ;;  %v248_v51 = vld [vmem:[#allocation10 + $0x18] sm:$0xff]  ;;  %v358_v52 = vld [vmem:[%s664_s4] ss:$0 sm:$0xff] }
  0x2c   :  { %229 = vmatpush.msra.mxu2 %v214_v24  ;;  %267 = vmatpush.msra.mxu3 %v258_v41  ;;  %v247_v56 = vld [vmem:[#allocation10 + $0x10] sm:$0xff]  ;;  %v246_v57 = vld [vmem:[#allocation10 + $0x8] sm:$0xff]  ;;  %v245_v58 = vld [vmem:[#allocation10] sm:$0xff] }
  0x2d   :  { %191 = vmatpush.msra.mxu1 %v170_v11  ;;  %v301_v59 = vld [vmem:[#allocation11 + $0x78] sm:$0xff]  ;;  %v300_v60 = vld [vmem:[#allocation11 + $0x70] sm:$0xff]  ;;  %v299_v61 = vld [vmem:[#allocation11 + $0x68] sm:$0xff] }
  0x2e   :  { %230 = vmatpush.msra.mxu2 %v213_v25  ;;  %268 = vmatpush.msra.mxu3 %v257_v42  ;;  %v298_v62 = vld [vmem:[#allocation11 + $0x60] sm:$0xff]  ;;  %v297_v63 = vld [vmem:[#allocation11 + $0x58] sm:$0xff]  ;;  %v296_v0 = vld [vmem:[#allocation11 + $0x50] sm:$0xff] }
  0x2f   :  { %192 = vmatpush.msra.mxu1 %v169_v12  ;;  %306 = vmatpush.msrb.mxu0 %v301_v59  ;;  %v295_v1 = vld [vmem:[#allocation11 + $0x48] sm:$0xff]  ;;  %v294_v2 = vld [vmem:[#allocation11 + $0x40] sm:$0xff]  ;;  %v293_v3 = vld [vmem:[#allocation11 + $0x38] sm:$0xff] }
  0x30   :  { %231 = vmatpush.msra.mxu2 %v212_v26  ;;  %269 = vmatpush.msra.mxu3 %v256_v43  ;;  %v292_v4 = vld [vmem:[#allocation11 + $0x30] sm:$0xff]  ;;  %v291_v5 = vld [vmem:[#allocation11 + $0x28] sm:$0xff]  ;;  %v290_v6 = vld [vmem:[#allocation11 + $0x20] sm:$0xff] }
  0x31   :  { %193 = vmatpush.msra.mxu1 %v168_v13  ;;  %307 = vmatpush.msrb.mxu0 %v300_v60  ;;  %v289_v7 = vld [vmem:[#allocation11 + $0x18] sm:$0xff]  ;;  %v359_v8 = vld [vmem:[%s666_s6] ss:$0 sm:$0xff]  ;;  %v288_v12 = vld [vmem:[#allocation11 + $0x10] sm:$0xff] }
  0x32   :  { %232 = vmatpush.msra.mxu2 %v211_v27  ;;  %270 = vmatpush.msra.mxu3 %v255_v44  ;;  %v287_v13 = vld [vmem:[#allocation11 + $0x8] sm:$0xff] }
  0x33   :  { %194 = vmatpush.msra.mxu1 %v167_v14  ;;  %308 = vmatpush.msrb.mxu0 %v299_v61  ;;  %v286_v14 = vld [vmem:[#allocation11] sm:$0xff]  ;;  %v361_v19 = vld [vmem:[%s670_s10] ss:$0 sm:$0xff] }
  0x34   :  { %233 = vmatpush.msra.mxu2 %v210_v28  ;;  %271 = vmatpush.msra.mxu3 %v254_v45 }
  0x35   :  { %195 = vmatpush.msra.mxu1 %v166_v15  ;;  %309 = vmatpush.msrb.mxu0 %v298_v62  ;;  %v360_v15 = vld [vmem:[%s668_s8] ss:$0 sm:$0xff] }
  0x36   :  { %234 = vmatpush.msra.mxu2 %v209_v29  ;;  %272 = vmatpush.msra.mxu3 %v253_v46 }
  0x37   :  { %196 = vmatpush.msra.mxu1 %v165_v16  ;;  %310 = vmatpush.msrb.mxu0 %v297_v63 }
  0x38   :  { %235 = vmatpush.msra.mxu2 %v208_v30  ;;  %273 = vmatpush.msra.mxu3 %v252_v47 }
  0x39   :  { %197 = vmatpush.msra.mxu1 %v164_v17  ;;  %311 = vmatpush.msrb.mxu0 %v296_v0 }
  0x3a   :  { %236 = vmatpush.msra.mxu2 %v207_v31  ;;  %274 = vmatpush.msra.mxu3 %v251_v48 }
  0x3b   :  { %198 = vmatpush.msra.mxu1 %v163_v18  ;;  %312 = vmatpush.msrb.mxu0 %v295_v1 }
  0x3c   :  { %237 = vmatpush.msra.mxu2 %v206_v36  ;;  %275 = vmatpush.msra.mxu3 %v250_v49 }
  0x3d   :  { %313 = vmatpush.msrb.mxu0 %v294_v2 }
  0x3e   :  { %238 = vmatpush.msra.mxu2 %v205_v37  ;;  %276 = vmatpush.msra.mxu3 %v249_v50 }
  0x3f   :  { %314 = vmatpush.msrb.mxu0 %v293_v3 }
  0x40   :  { %239 = vmatpush.msra.mxu2 %v204_v38  ;;  %277 = vmatpush.msra.mxu3 %v248_v51 }
  0x41   :  { %315 = vmatpush.msrb.mxu0 %v292_v4 }
  0x42   :  { %278 = vmatpush.msra.mxu3 %v247_v56 }
  0x43   :  { %316 = vmatpush.msrb.mxu0 %v291_v5 }
  0x44   :  { %279 = vmatpush.msra.mxu3 %v246_v57 }
  0x45   :  { %317 = vmatpush.msrb.mxu0 %v290_v6 }
  0x46   :  { %280 = vmatpush.msra.mxu3 %v245_v58 }
  0x47   :  { %318 = vmatpush.msrb.mxu0 %v289_v7 }
  0x49   :  { %319 = vmatpush.msrb.mxu0 %v288_v12 }
  0x4b   :  { %320 = vmatpush.msrb.mxu0 %v287_v13 }
  0x4d   :  { %321 = vmatpush.msrb.mxu0 %v286_v14 }
  0x9c   :  { %v159_v33 = vpop.f32.mrf.mxu0 }
  0x9d   :  { %v160_v34 = vadd.f32 %v357_v32, %v159_v33 }
  0x9f   :  { %v162_v35 = vmax.f32 %v160_v34, 0.0 }
  0xa1   :  { %199 = vmatmul.f32.vlgmr.msra.gmra.mxu1 %v162_v35 }
 0x11e   :  { %v200_v53 = vpop.f32.mrf.mxu1 }
 0x11f   :  { %v201_v54 = vadd.f32 %v358_v52, %v200_v53 }
 0x121   :  { %v203_v55 = vmax.f32 %v201_v54, 0.0 }
 0x123   :  { %240 = vmatmul.f32.vlgmr.msra.gmra.mxu2 %v203_v55 }
 0x1a6   :  { %v241_v9 = vpop.f32.mrf.mxu2 }
 0x1a7   :  { %v242_v10 = vadd.f32 %v359_v8, %v241_v9 }
 0x1a9   :  { %v244_v11 = vmax.f32 %v242_v10, 0.0 }
 0x1ab   :  { %281 = vmatmul.f32.vlgmr.msra.gmra.mxu3 %v244_v11 }
 0x22e   :  { %v282_v16 = vpop.f32.mrf.mxu3 }
 0x22f   :  { %v283_v17 = vadd.f32 %v360_v15, %v282_v16 }
 0x231   :  { %v285_v18 = vmax.f32 %v283_v17, 0.0 }
 0x233   :  { %322 = vmatmul.f32.vlgmr.msrb.gmra.mxu0 %v285_v18 }
 0x2b0   :  { %v323_v20 = vpop.f32.mrf.mxu0 }
 0x2b1   :  { %v324_v21 = vadd.f32 %v361_v19, %v323_v20 }
 0x2b3   :  { %326 = vst [vmem:[#allocation13] sm:$0xff] %v324_v21 }
 0x2b4   :  { %337 = dma.vmem_to_hbm [thread:$0]  %s333_s5, 128, %s335_s14, [#allocation4]  }
 0x2b5   :  { %538 = dma.done.wait [#allocation4], 128  }
 0x2b6   :  { %539 = vsyncadd [#allocation4], 4294967168 }
 0x2b7   :  { %342 = vsyncpa [#allocation3], 1 }
 0x2b8   :  { %343 = vsyncpa [#allocation6], 1 }
 0x2b9   :  { %344 = vsyncpa [#allocation9], 1 }
 0x2ba   :  { %345 = vsyncpa [#allocation12], 1 }
 0x2bb   :  { %346 = vsyncpa [#allocation4], 1 }

</bundles_post_ra>
